<compile_context>
chip_gen: v7x
topology: tpu7x:2x2x1
jax: 0.10.0
libtpu: 0.0.40
codegen_flags: <defaults>
</compile_context>

<pallas_src>
import jax
import jax.numpy as jnp
from jax.experimental import pallas as pl
from jax.experimental.pallas import tpu as pltpu


def _linear_kernel(x_ref, wt_ref, b_ref, o_ref):
    """One (i, j, k) grid step of y = x @ W.T + b.

    x_ref : (tm, tk)  activation tile
    wt_ref: (tk, tn)  weight tile, already in MXU-canonical (K, N) layout
    b_ref : (1,  tn)  bias tile
    o_ref : (tm, tn)  f32 output tile, resident in VMEM across the K axis
    """
    # Initialize the resident output tile with the bias on the first K step.
    # (Valid because o_ref dtype == accumulation dtype == f32; reintroduce an
    #  f32 scratch if a bf16 output is ever emitted.)
    @pl.when(pl.program_id(2) == 0)
    def _():
        o_ref[...] = jnp.broadcast_to(b_ref[...], o_ref.shape)

    # MXU matmul accumulated directly into the output tile.
    o_ref[...] += jnp.dot(x_ref[...], wt_ref[...],
                          preferred_element_type=jnp.float32)


def _round_up(x, m):
    return ((x + m - 1) // m) * m


def _balanced_tile(extent, max_tile, align):
    """Tile <= ~max_tile that balances padding waste across ceil(extent/max_tile) tiles."""
    if extent <= max_tile:
        return _round_up(extent, align)
    n_tiles = -(-extent // max_tile)                 # ceil
    return _round_up(-(-extent // n_tiles), align)   # ceil, aligned


def linear_forward(x, weight, bias):
    """y = x @ weight.T + bias (PyTorch nn.Linear semantics) via a Pallas kernel.

    x:      (batch, input_size)         float32
    weight: (num_classes, input_size)   float32 (PyTorch layout)
    bias:   (num_classes,)              float32
    """
    batch, input_size = x.shape
    num_classes, k_dim = weight.shape
    assert k_dim == input_size
    dtype = jnp.float32
    x = x.astype(dtype)

    # One-time parameter preprocessing: transpose to MXU-canonical (K, N).
    # Under jit the weight is a constant, so this (and any pad below) is paid
    # once / constant-folded rather than once per kernel step.
    wt = weight.astype(dtype).T                       # (K, N)
    b2d = bias.astype(dtype).reshape(1, num_classes)  # (1, N)

    itemsize = 4

    # ---------------- small-shape fast path (single tile, no padding) -------
    small_bytes = itemsize * (batch * input_size
                              + input_size * num_classes
                              + batch * num_classes
                              + num_classes)
    if 2 * small_bytes <= (8 << 20):
        # Full-extent blocks are exempt from the (8,128) divisibility rule, so
        # no jnp.pad and no post-kernel slice is needed.
        return pl.pallas_call(
            _linear_kernel,
            out_shape=jax.ShapeDtypeStruct((batch, num_classes), dtype),
            grid=(1, 1, 1),
            in_specs=[
                pl.BlockSpec((batch, input_size), lambda i, j, k: (0, 0)),
                pl.BlockSpec((input_size, num_classes), lambda i, j, k: (0, 0)),
                pl.BlockSpec((1, num_classes), lambda i, j, k: (0, 0)),
            ],
            out_specs=pl.BlockSpec((batch, num_classes), lambda i, j, k: (0, 0)),
            compiler_params=pltpu.CompilerParams(
                dimension_semantics=("arbitrary", "arbitrary", "arbitrary"),
                vmem_limit_bytes=32 * 1024 * 1024,
            ),
        )(x, wt, b2d)

    # ---------------- tiled (M, N, K) path -----------------------------------
    # N (lane) tile: classifiers usually fit a single tn tile.
    tn = _balanced_tile(num_classes, 256, 128)
    Np = _round_up(num_classes, tn)
    # K (reduction) tile: big tiles -> fewer grid steps, larger contiguous DMAs.
    tk = _balanced_tile(input_size, 1024, 128)
    Kp = _round_up(input_size, tk)
    # M (batch) tile: when N fits a single tile, the weight is re-streamed from
    # HBM once per M tile, so raise tm aggressively to amortize that read.
    tm_max = 1024 if (Np // tn) == 1 else 256
    tm = _balanced_tile(batch, tm_max, 8)
    Mp = _round_up(batch, tm)

    # VMEM budget: double-buffered x/W/bias inputs + output tile, kept well
    # under v7x's 64 MiB per-TensorCore VMEM so the kernel ports across
    # v5e / v6e / v7x without retuning.
    def _footprint(tm_):
        return 2 * itemsize * (tm_ * tk + tk * tn + tm_ * tn + tn)

    budget = 48 << 20
    while _footprint(tm) > budget and tm > 8:
        tm = max(8, _round_up(tm // 2, 8))
        Mp = _round_up(batch, tm)
    vmem_limit = min(_footprint(tm) + (8 << 20), 64 << 20)

    # Zero-pad to tile multiples only when actually needed (pads are full
    # HBM passes over the arrays; skip them when shapes already divide).
    x_p = x if (Mp, Kp) == (batch, input_size) else jnp.pad(
        x, ((0, Mp - batch), (0, Kp - input_size)))
    wt_p = wt if (Kp, Np) == (input_size, num_classes) else jnp.pad(
        wt, ((0, Kp - input_size), (0, Np - num_classes)))
    b_p = b2d if Np == num_classes else jnp.pad(
        b2d, ((0, 0), (0, Np - num_classes)))

    grid = (Mp // tm, Np // tn, Kp // tk)

    out = pl.pallas_call(
        _linear_kernel,
        out_shape=jax.ShapeDtypeStruct((Mp, Np), dtype),
        grid=grid,
        in_specs=[
            pl.BlockSpec((tm, tk), lambda i, j, k: (i, k)),   # x tile
            pl.BlockSpec((tk, tn), lambda i, j, k: (k, j)),   # weight tile (K, N)
            pl.BlockSpec((1, tn), lambda i, j, k: (0, j)),    # bias tile
        ],
        out_specs=pl.BlockSpec((tm, tn), lambda i, j, k: (i, j)),
        compiler_params=pltpu.CompilerParams(
            dimension_semantics=("parallel", "parallel", "arbitrary"),
            vmem_limit_bytes=vmem_limit,
        ),
    )(x_p, wt_p, b_p)

    if (Mp, Np) != (batch, num_classes):
        out = out[:batch, :num_classes]
    return out


def predict_proba(x, weight, bias):
    # torch.nn.Softmax(dim=0): softmax across the batch dimension.
    logits = linear_forward(x, weight, bias)
    return jax.nn.softmax(logits, axis=0)


def predict(x, weight, bias, dim=1):
    logits = linear_forward(x, weight, bias)
    return jnp.argmax(logits, axis=dim)


if __name__ == "__main__":
    key = jax.random.PRNGKey(0)
    kx, kw, kb = jax.random.split(key, 3)

    # ---- small shapes matching the module (hits the single-tile fast path) --
    batch, input_size, num_classes = 8, 32, 16
    x = jax.random.normal(kx, (batch, input_size), dtype=jnp.float32)
    bound = 1.0 / jnp.sqrt(jnp.float32(input_size))
    weight = jax.random.uniform(kw, (num_classes, input_size),
                                minval=-bound, maxval=bound, dtype=jnp.float32)
    bias = jax.random.uniform(kb, (num_classes,),
                              minval=-bound, maxval=bound, dtype=jnp.float32)

    y = jax.block_until_ready(linear_forward(x, weight, bias))
    y_ref = jnp.dot(x, weight.T, precision=jax.lax.Precision.HIGHEST) + bias
    assert y.shape == (batch, num_classes)
    assert jnp.allclose(y, y_ref, atol=1e-5, rtol=1e-5)

    p = jax.block_until_ready(predict_proba(x, weight, bias))
    c = jax.block_until_ready(predict(x, weight, bias))
    assert p.shape == (batch, num_classes) and c.shape == (batch,)
    assert jnp.allclose(p, jax.nn.softmax(y_ref, axis=0), atol=1e-5, rtol=1e-5)
    assert jnp.array_equal(c, jnp.argmax(y_ref, axis=1))

    # ---- larger, awkward shapes (exercises the tiled K-reduction path,
    #      balanced tiles, padding and the post-kernel slice) ----------------
    kx2, kw2, kb2 = jax.random.split(jax.random.PRNGKey(1), 3)
    b2, d2, c2 = 1000, 1100, 200
    x2 = jax.random.normal(kx2, (b2, d2), dtype=jnp.float32)
    w2 = 0.02 * jax.random.normal(kw2, (c2, d2), dtype=jnp.float32)
    bb2 = jax.random.normal(kb2, (c2,), dtype=jnp.float32)
    y2 = jax.block_until_ready(linear_forward(x2, w2, bb2))
    y2_ref = jnp.dot(x2, w2.T, precision=jax.lax.Precision.HIGHEST) + bb2
    assert y2.shape == (b2, c2)
    assert jnp.allclose(y2, y2_ref, atol=1e-2, rtol=1e-2)

    print("KERNEL_OK")
</pallas_src>

<mosaic_0001>
module attributes {stable_mosaic.version = 11 : i64} {
  func.func @_linear_kernel(%arg0: i32, %arg1: i32, %arg2: i32, %arg3: memref<8x32xf32, #tpu.memory_space<vmem>>, %arg4: memref<32x16xf32, #tpu.memory_space<vmem>>, %arg5: memref<1x16xf32, #tpu.memory_space<vmem>>, %arg6: memref<8x16xf32, #tpu.memory_space<vmem>>) attributes {dimension_semantics = [#tpu.dimension_semantics<arbitrary>, #tpu.dimension_semantics<arbitrary>, #tpu.dimension_semantics<arbitrary>], iteration_bounds = array<i64: 1, 1, 1>, scalar_prefetch = 0 : i64, scratch_operands = 0 : i64, tpu.core_type = #tpu.core_type<tc>, window_params = [{pipeline_mode = #tpu.pipeline_mode<synchronous>, transform_indices = @transform_0, window_bounds = array<i64: 8, 32>}, {pipeline_mode = #tpu.pipeline_mode<synchronous>, transform_indices = @transform_1, window_bounds = array<i64: 32, 16>}, {pipeline_mode = #tpu.pipeline_mode<synchronous>, transform_indices = @transform_2, window_bounds = array<i64: 1, 16>}, {pipeline_mode = #tpu.pipeline_mode<synchronous>, transform_indices = @transform_3, window_bounds = array<i64: 8, 16>}]} {
    %c0_i32 = arith.constant 0 : i32
    %0 = arith.cmpi eq, %arg2, %c0_i32 : i32
    %1 = arith.extui %0 : i1 to i32
    %c0_i32_0 = arith.constant 0 : i32
    %2 = arith.cmpi ne, %1, %c0_i32_0 : i32
    scf.if %2 {
      %c0_8 = arith.constant 0 : index
      %c0_9 = arith.constant 0 : index
      %9 = vector.load %arg5[%c0_8, %c0_9] : memref<1x16xf32, #tpu.memory_space<vmem>>, vector<1x16xf32>
      %10 = vector.shape_cast %9 : vector<1x16xf32> to vector<1x16xf32>
      %11 = vector.broadcast %10 : vector<1x16xf32> to vector<8x16xf32>
      %c0_10 = arith.constant 0 : index
      %c0_11 = arith.constant 0 : index
      %12 = vector.load %arg6[%c0_10, %c0_11] : memref<8x16xf32, #tpu.memory_space<vmem>>, vector<8x16xf32>
      tpu.vector_store %arg6[%c0_10, %c0_11], %11 {strides = array<i32>} : memref<8x16xf32, #tpu.memory_space<vmem>>, vector<8x16xf32>,
    } else {
    }
    %c0 = arith.constant 0 : index
    %c0_1 = arith.constant 0 : index
    %3 = vector.load %arg6[%c0, %c0_1] : memref<8x16xf32, #tpu.memory_space<vmem>>, vector<8x16xf32>
    %c0_2 = arith.constant 0 : index
    %c0_3 = arith.constant 0 : index
    %4 = vector.load %arg3[%c0_2, %c0_3] : memref<8x32xf32, #tpu.memory_space<vmem>>, vector<8x32xf32>
    %c0_4 = arith.constant 0 : index
    %c0_5 = arith.constant 0 : index
    %5 = vector.load %arg4[%c0_4, %c0_5] : memref<32x16xf32, #tpu.memory_space<vmem>>, vector<32x16xf32>
    %cst = arith.constant dense<0.000000e+00> : vector<8x16xf32>
    %6 = tpu.matmul %4, %5, %cst {dimension_numbers = #tpu.dot_dimension_numbers<[1], [0], [0], [1], [0, 0, 1, 1], [], []>} : vector<8x32xf32>, vector<32x16xf32>, vector<8x16xf32> -> vector<8x16xf32>
    %7 = arith.addf %3, %6 : vector<8x16xf32>
    %c0_6 = arith.constant 0 : index
    %c0_7 = arith.constant 0 : index
    %8 = vector.load %arg6[%c0_6, %c0_7] : memref<8x16xf32, #tpu.memory_space<vmem>>, vector<8x16xf32>
    tpu.vector_store %arg6[%c0_6, %c0_7], %7 {strides = array<i32>} : memref<8x16xf32, #tpu.memory_space<vmem>>, vector<8x16xf32>,
    return
  }
  func.func @transform_0(%arg0: i32, %arg1: i32, %arg2: i32) -> (i32, i32) {
    %c0_i32 = arith.constant 0 : i32
    %c0_i32_0 = arith.constant 0 : i32
    %c0_i32_1 = arith.constant 0 : i32
    return %c0_i32, %c0_i32_0 : i32, i32
  }
  func.func @transform_1(%arg0: i32, %arg1: i32, %arg2: i32) -> (i32, i32) {
    %c0_i32 = arith.constant 0 : i32
    %c0_i32_0 = arith.constant 0 : i32
    %c0_i32_1 = arith.constant 0 : i32
    return %c0_i32, %c0_i32_0 : i32, i32
  }
  func.func @transform_2(%arg0: i32, %arg1: i32, %arg2: i32) -> (i32, i32) {
    %c0_i32 = arith.constant 0 : i32
    %c0_i32_0 = arith.constant 0 : i32
    %c0_i32_1 = arith.constant 0 : i32
    return %c0_i32, %c0_i32_0 : i32, i32
  }
  func.func @transform_3(%arg0: i32, %arg1: i32, %arg2: i32) -> (i32, i32) {
    %c0_i32 = arith.constant 0 : i32
    %c0_i32_0 = arith.constant 0 : i32
    %c0_i32_1 = arith.constant 0 : i32
    return %c0_i32, %c0_i32_0 : i32, i32
  }
}

</mosaic_0001>

<bundles_post_ra>
// kernel: tpu_custom_call.1
= control target key start
LH: loop header
LB: loop body
LE: loop exit
PB: predicated region body
PF: predicated region fallthrough
CT: control target
= control target key end

     0   :  { %v177_v3 = vmov 0.0|0.0   ;;  %vm178_vm0 = vmmov 0   ;;  %v179_v6 = vmov 0.0   ;;  %vm26_vm1 = vcmask 130048   ;;  %s233_s0 = inlined_call_operand.vmem [shape: f32[8,32], index: 0, kind: input, shape index: {}]   ;;  %s234_s1 = inlined_call_operand.vmem [shape: f32[32,16], index: 1, kind: input, shape index: {}]   ;;  %s235_s2 = inlined_call_operand.vmem [shape: f32[1,16], index: 2, kind: input, shape index: {}]   ;;  %s236_s3 = inlined_call_operand.hbm [shape: f32[8,16], index: 3, kind: output, shape index: {}]  }
   0x1   :  { %v30_v0 = vld [vmem:[%s234_s1] sm:$0xff]  ;;  %v31_v1 = vld [vmem:[%s234_s1 + $0x8] sm:$0xff]  ;;  %v32_v2 = vld [vmem:[%s234_s1 + $0x10] sm:$0xff]  ;;  %143 = vmatprep.subr.bf16.mxu0 %v177_v3  ;;  %140 = vmatprep.mubr.msk.f32.mxu0 %vm178_vm0, %v179_v6 }
   0x2   :  { %v144_v4 = vpack.c.bf16 %v31_v1, %v30_v0  ;;  %v33_v5 = vld [vmem:[%s234_s1 + $0x18] sm:$0xff]  ;;  %v125_v7 = vld [vmem:[%s235_s2] ss:$0 sm:$0xff] }
   0x3   :  { %27 = vst.msk [vmem:[#allocation2] sm:$0xff] %vm26_vm1, %v125_v7 }
   0x4   :  { %8 = vsyncpa [#allocation3], 0  ;;  %145 = vmatpush3.bf16.msra.mxu0 %v144_v4  ;;  %v147_v8 = vpack.c.bf16 %v33_v5, %v32_v2  ;;  %v29_v9 = vld [vmem:[%s233_s0] sm:$0xff]  ;;  %vm34_vm2 = vcmask 261120   ;;  %s180_s1 = smov [#allocation2]  }
   0x5   :  { %146 = vmatprep.subr.bf16.mxu0 %v177_v3  ;;  %s117_s24 = sshll.u32 %s180_s1, 4  ;;  %s118_s24 = int_to_ptr.vmem [resolvable:$true] %s117_s24 }
   0x6   :  { %s153_s2 = scalar_lea.vmem %s118_s24, 128  ;;  %p158_p1 = scmp.lt.s32.totalorder %s118_s24, %s118_s24 }
   0x7   :  { %p154_p0 = scmp.ne.s32.totalorder %s118_s24, %s153_s2  ;;  %p159_p2 = scmp.lt.s32.totalorder %s153_s2, %s153_s2 }
   0x8   :  { %148 = vmatpush3.bf16.msra.mxu0 %v147_v8 }
   0x9   :  { %p160_p3 = por %p159_p2, %p158_p1 }
   0xa   :  { %v28_v10 = vld [vmem:[#allocation2] sm:$0xff] }
   0xb   :  { %141 = vmatmul.mubr.msk.f32.vlgmr.msra.gmra.mrb[0].mxu0 %vm34_vm2, %v29_v9  ;;  %p161_p4 = pnand %p160_p3, %p154_p0 }
  0xde   :  { %v104_v11 = vpop.f32.mrb[0].mxu0 }
  0xdf   :  { %v108_v12 = vadd.f32 %v104_v11, %v28_v10  ;;  %v142_v13 = vpop.f32.mrb[1].mxu0 }
  0xe1   :  { %110 = vst.msk [vmem:[#allocation2] sm:$0xff] %vm26_vm1, %v108_v12 }
  0xe2   :  { %164 = shalt.err (!%p161_p4)
}
  0xe3   :  { %s165_s26 = scalar_lea.hbm %s236_s3, 128 }
  0xe4   :  { %p166_p5 = scmp.ne.s32.totalorder %s236_s3, %s165_s26  ;;  %p169_p6 = scmp.lt.u32.totalorder %s165_s26, %s236_s3 }
  0xe6   :  { %p171_p7 = pnand %p169_p6, %p166_p5 }
  0xe8   :  { %174 = shalt.err (!%p171_p7)
}
  0xe9   :  { %120 = dma.vmem_to_hbm [thread:$0]  %s118_s24, 128, %s236_s3, [#allocation3]  }
  0xea   :  { %175 = dma.done.wait [#allocation3], 128  }
  0xeb   :  { %176 = vsyncadd [#allocation3], 4294967168 }
  0xec   :  { %124 = vsyncpa [#allocation3], 1 }

</bundles_post_ra>
